<compile_context>
chip_gen: v7x
topology: tpu7x:2x2x1
jax: 0.10.0
libtpu: 0.0.40
codegen_flags: <defaults>
</compile_context>

<pallas_src>
import functools

import jax
import jax.numpy as jnp
from jax.experimental import pallas as pl
from jax.experimental.pallas import tpu as pltpu


def _round_up(x, m):
    return -(-x // m) * m


def _single_score_kernel(v_ref, wext_ref, sc_ref, out_ref, *, n_words):
    # v_ref   : (TILE_N, D)  tile of v in its native layout (bbox on sublanes)
    # wext_ref: (S_pad, D)   folded weights (see wrapper), resident across the grid
    # sc_ref  : (3,) SMEM    [fc_w.(w*b), ||w*b||^2, fc_bias]
    # out_ref : (1, TILE_N)  lane-dense logits row
    #
    # M = Wext @ v^T : contract the two D axes (Q.K^T pattern) -> (S_pad, TILE_N)
    m = jax.lax.dot_general(
        wext_ref[...], v_ref[...],
        dimension_numbers=(((1,), (1,)), ((), ())),
        preferred_element_type=jnp.float32)

    p = m[:n_words, :]                                       # What @ v^T   (S, TILE_N)
    num = m[n_words:n_words + 1, :] + sc_ref[0]              # x . fc_w     (1, TILE_N)
    sumsq = (jnp.sum(p * p, axis=0, keepdims=True)           # ||x||^2      (1, TILE_N)
             + m[n_words + 1:n_words + 2, :] + sc_ref[1])

    # F.normalize clamp: x / max(||x||, 1e-12) == x * rsqrt(max(||x||^2, 1e-24))
    inv_norm = jax.lax.rsqrt(jnp.maximum(sumsq, 1e-24))
    out_ref[...] = (num * inv_norm + sc_ref[2]).astype(out_ref.dtype)


@functools.partial(jax.jit, static_argnames=("tile_n",))
def single_score(v, w, W_weight, W_bias, fc_weight, fc_bias, *, tile_n=8192):
    """
    v:         (num_bbox, vis_dim) float32 or bfloat16
    w:         (word_size,)        float32
    W_weight:  (word_size, vis_dim)
    W_bias:    (word_size,)
    fc_weight: (1, word_size)
    fc_bias:   (1,)
    returns:   (num_bbox,) float32
    """
    N, D = v.shape
    S = w.shape[0]
    s_pad = _round_up(S + 2, 8)

    # ---- fold constants into one extended weight (tiny, wrapper-side math) ----
    w32 = w.astype(jnp.float32)
    what = W_weight.astype(jnp.float32) * w32[:, None]          # diag(w) @ W     (S, D)
    bhat = w32 * W_bias.astype(jnp.float32)                     # w * b           (S,)
    fc_w = fc_weight.reshape(-1).astype(jnp.float32)            # (S,)
    row_num = fc_w @ what                                       # (D,)
    row_cross = 2.0 * (bhat @ what)                             # (D,)
    wext = jnp.concatenate(
        [what, row_num[None, :], row_cross[None, :],
         jnp.zeros((s_pad - (S + 2), D), jnp.float32)], axis=0)  # (S_pad, D)
    wext = wext.astype(v.dtype)         # bf16 path: cast the tiny weight, never v

    scalars = jnp.stack([
        jnp.dot(fc_w, bhat),                                    # numerator offset
        jnp.dot(bhat, bhat),                                    # ||w*b||^2
        fc_bias.astype(jnp.float32).reshape(()),                # fc bias
    ]).astype(jnp.float32)                                      # (3,) -> SMEM

    # ---- tiling: big lane tiles, but >=2 grid steps for v7x's 2 TensorCores ----
    if N <= 256:
        tile = N                                   # single exact (full-array) block
    else:
        tile = min(_round_up(tile_n, 128), _round_up(-(-N // 2), 128))
    num_tiles = -(-N // tile)                      # partial last block is masked

    kernel = functools.partial(_single_score_kernel, n_words=S)

    out = pl.pallas_call(
        kernel,
        out_shape=jax.ShapeDtypeStruct((1, N), jnp.float32),
        grid_spec=pltpu.PrefetchScalarGridSpec(
            num_scalar_prefetch=0,
            grid=(num_tiles,),
            in_specs=[
                pl.BlockSpec((tile, D), lambda i: (i, 0)),           # v tile (native layout)
                pl.BlockSpec((s_pad, D), lambda i: (0, 0)),          # folded weight (resident)
                pl.BlockSpec(memory_space=pltpu.MemorySpace.SMEM),   # 3 scalars
            ],
            out_specs=pl.BlockSpec((1, tile), lambda i: (0, i)),     # lane-dense logits
        ),
        compiler_params=pltpu.CompilerParams(
            dimension_semantics=("parallel",),
            vmem_limit_bytes=32 * 1024 * 1024),
    )(v, wext, scalars)

    return out[0]


def single_score_ref(v, w, W_weight, W_bias, fc_weight, fc_bias):
    """Pure-JAX reference matching the PyTorch semantics."""
    proj = v @ W_weight.T + W_bias
    x = proj * w[None, :]
    norm = jnp.sqrt(jnp.sum(x * x, axis=1, keepdims=True))
    f = x / jnp.maximum(norm, 1e-12)
    return (f @ fc_weight.T + fc_bias)[:, 0]


if __name__ == "__main__":
    key = jax.random.PRNGKey(0)
    k_v, k_w, k_W, k_Wb, k_fc, k_fcb, k_v2 = jax.random.split(key, 7)

    vis_dim, word_size = 32, 64

    # Deterministic synthetic parameters (shapes per nn.Linear in __init__).
    W_weight = 0.1 * jax.random.normal(k_W, (word_size, vis_dim), dtype=jnp.float32)
    W_bias = 0.01 * jax.random.normal(k_Wb, (word_size,), dtype=jnp.float32)
    fc_weight = 0.1 * jax.random.normal(k_fc, (1, word_size), dtype=jnp.float32)
    fc_bias = 0.01 * jax.random.normal(k_fcb, (1,), dtype=jnp.float32)
    w = jax.random.normal(k_w, (word_size,), dtype=jnp.float32)

    # Case 1: tiny bbox count -> single exact block, grid=(1,).
    v1 = jax.random.normal(k_v, (16, vis_dim), dtype=jnp.float32)
    out1 = jax.block_until_ready(single_score(v1, w, W_weight, W_bias, fc_weight, fc_bias))
    ref1 = single_score_ref(v1, w, W_weight, W_bias, fc_weight, fc_bias)
    assert out1.shape == (16,)
    assert jnp.allclose(out1, ref1, atol=1e-4, rtol=1e-4), (out1, ref1)

    # Case 2: non-multiple bbox count -> tile=512, grid=(2,), masked partial tail.
    v2 = jax.random.normal(k_v2, (1000, vis_dim), dtype=jnp.float32)
    out2 = jax.block_until_ready(single_score(v2, w, W_weight, W_bias, fc_weight, fc_bias))
    ref2 = single_score_ref(v2, w, W_weight, W_bias, fc_weight, fc_bias)
    assert out2.shape == (1000,)
    assert jnp.allclose(out2, ref2, atol=1e-4, rtol=1e-4)

    # Case 3: bf16 activations (halves HBM traffic for v on the mem-bound path);
    # f32 accumulation, loose tolerance vs the f32 reference.
    v2_bf = v2.astype(jnp.bfloat16)
    out3 = jax.block_until_ready(single_score(v2_bf, w, W_weight, W_bias, fc_weight, fc_bias))
    ref3 = single_score_ref(v2_bf.astype(jnp.float32), w, W_weight, W_bias, fc_weight, fc_bias)
    assert out3.shape == (1000,)
    assert jnp.allclose(out3, ref3, atol=1e-1, rtol=1e-1)

    print("KERNEL_OK")
</pallas_src>

<mosaic_0001>
module attributes {stable_mosaic.version = 11 : i64} {
  func.func @_single_score_kernel(%arg0: i32, %arg1: memref<16x32xf32, #tpu.memory_space<vmem>>, %arg2: memref<72x32xf32, #tpu.memory_space<vmem>>, %arg3: memref<3xf32, #tpu.memory_space<smem>>, %arg4: memref<1x16xf32, #tpu.memory_space<vmem>>) attributes {dimension_semantics = [#tpu.dimension_semantics<parallel>], iteration_bounds = array<i64: 1>, scalar_prefetch = 0 : i64, scratch_operands = 0 : i64, tpu.core_type = #tpu.core_type<tc>, window_params = [{transform_indices = @transform_0, window_bounds = array<i64: 16, 32>}, {pipeline_mode = #tpu.pipeline_mode<synchronous>, transform_indices = @transform_1, window_bounds = array<i64: 72, 32>}, {transform_indices = @transform_2, window_bounds = array<i64: 3>}, {transform_indices = @transform_3, window_bounds = array<i64: 1, 16>}]} {
    %c0 = arith.constant 0 : index
    %c0_0 = arith.constant 0 : index
    %0 = vector.load %arg2[%c0, %c0_0] : memref<72x32xf32, #tpu.memory_space<vmem>>, vector<72x32xf32>
    %c0_1 = arith.constant 0 : index
    %c0_2 = arith.constant 0 : index
    %1 = vector.load %arg1[%c0_1, %c0_2] : memref<16x32xf32, #tpu.memory_space<vmem>>, vector<16x32xf32>
    %cst = arith.constant dense<0.000000e+00> : vector<72x16xf32>
    %2 = tpu.matmul %0, %1, %cst {dimension_numbers = #tpu.dot_dimension_numbers<[1], [1], [0], [0], [0, 0, 1, 0], [], []>} : vector<72x32xf32>, vector<16x32xf32>, vector<72x16xf32> -> vector<72x16xf32>
    %3 = vector.extract_strided_slice %2 {offsets = [0, 0], sizes = [64, 16], strides = [1, 1]} : vector<72x16xf32> to vector<64x16xf32>
    %4 = vector.extract_strided_slice %2 {offsets = [64, 0], sizes = [1, 16], strides = [1, 1]} : vector<72x16xf32> to vector<1x16xf32>
    %c0_3 = arith.constant 0 : index
    %5 = memref.load %arg3[%c0_3] : memref<3xf32, #tpu.memory_space<smem>>
    %6 = vector.broadcast %5 : f32 to vector<1x16xf32>
    %7 = arith.addf %4, %6 : vector<1x16xf32>
    %8 = arith.mulf %3, %3 : vector<64x16xf32>
    %cst_4 = arith.constant dense<0.000000e+00> : vector<16xf32>
    %9 = vector.multi_reduction <add>, %8, %cst_4 [0] : vector<64x16xf32> to vector<16xf32>
    %10 = vector.shape_cast %9 : vector<16xf32> to vector<1x16xf32>
    %11 = vector.extract_strided_slice %2 {offsets = [65, 0], sizes = [1, 16], strides = [1, 1]} : vector<72x16xf32> to vector<1x16xf32>
    %12 = arith.addf %10, %11 : vector<1x16xf32>
    %c1 = arith.constant 1 : index
    %13 = memref.load %arg3[%c1] : memref<3xf32, #tpu.memory_space<smem>>
    %14 = vector.broadcast %13 : f32 to vector<1x16xf32>
    %15 = arith.addf %12, %14 : vector<1x16xf32>
    %cst_5 = arith.constant 1.000000e-24 : f32
    %16 = vector.broadcast %cst_5 : f32 to vector<1x16xf32>
    %17 = arith.maximumf %15, %16 : vector<1x16xf32>
    %18 = math.rsqrt %17 : vector<1x16xf32>
    %19 = arith.mulf %7, %18 : vector<1x16xf32>
    %c2 = arith.constant 2 : index
    %20 = memref.load %arg3[%c2] : memref<3xf32, #tpu.memory_space<smem>>
    %21 = vector.broadcast %20 : f32 to vector<1x16xf32>
    %22 = arith.addf %19, %21 : vector<1x16xf32>
    %c0_6 = arith.constant 0 : index
    %c0_7 = arith.constant 0 : index
    %23 = vector.load %arg4[%c0_6, %c0_7] : memref<1x16xf32, #tpu.memory_space<vmem>>, vector<1x16xf32>
    tpu.vector_store %arg4[%c0_6, %c0_7], %22 {strides = array<i32>} : memref<1x16xf32, #tpu.memory_space<vmem>>, vector<1x16xf32>,
    return
  }
  func.func @transform_0(%arg0: i32) -> (i32, i32) {
    %c0_i32 = arith.constant 0 : i32
    %c0_i32_0 = arith.constant 0 : i32
    return %arg0, %c0_i32 : i32, i32
  }
  func.func @transform_1(%arg0: i32) -> (i32, i32) {
    %c0_i32 = arith.constant 0 : i32
    %c0_i32_0 = arith.constant 0 : i32
    %c0_i32_1 = arith.constant 0 : i32
    return %c0_i32, %c0_i32_0 : i32, i32
  }
  func.func @transform_2(%arg0: i32) -> i32 {
    %c0_i32 = arith.constant 0 : i32
    %c0_i32_0 = arith.constant 0 : i32
    return %c0_i32 : i32
  }
  func.func @transform_3(%arg0: i32) -> (i32, i32) {
    %c0_i32 = arith.constant 0 : i32
    %c0_i32_0 = arith.constant 0 : i32
    return %c0_i32, %arg0 : i32, i32
  }
}

</mosaic_0001>

<bundles_post_ra>
// kernel: single_score.1
= control target key start
LH: loop header
LB: loop body
LE: loop exit
PB: predicated region body
PF: predicated region fallthrough
CT: control target
= control target key end

     0   :  { %8 = vsyncpa [#allocation4], 0  ;;  %s453_s0 = inlined_call_operand.vmem [shape: f32[16,32], index: 0, kind: input, shape index: {}]   ;;  %s454_s1 = inlined_call_operand.vmem [shape: f32[72,32], index: 1, kind: input, shape index: {}]   ;;  %s455_s2 = inlined_call_operand.vmem [shape: f32[3], index: 2, kind: input, shape index: {}]   ;;  %s456_s3 = inlined_call_operand.hbm [shape: f32[1,16], index: 3, kind: output, shape index: {}]  }
   0x1   :  { %9 = vsyncpa [#allocation3], 0  ;;  %s20_s14 = sshll.u32 %s455_s2, 4  ;;  %s21_s14 = int_to_ptr.vmem [resolvable:$true] %s20_s14 }
   0x2   :  { %s314_s15 = scalar_lea.vmem %s21_s14, 16  ;;  %p319_p1 = scmp.lt.s32.totalorder %s21_s14, %s21_s14 }
   0x3   :  { %p315_p0 = scmp.ne.s32.totalorder %s21_s14, %s314_s15  ;;  %p320_p2 = scmp.lt.s32.totalorder %s314_s15, %s314_s15 }
   0x5   :  { %p321_p3 = por %p320_p2, %p319_p1 }
   0x7   :  { %p322_p4 = pnand %p321_p3, %p315_p0 }
   0x9   :  { %325 = shalt.err (!%p322_p4)
}
   0xa   :  { %s352_s16 = smov [#allocation2]  }
   0xb   :  { %23 = dma.vmem_to_smem %s21_s14, 16, %s352_s16, [#allocation4]  }
   0xc   :  { %348 = dma.done.wait [#allocation4], 16  }
   0xd   :  { %349 = vsyncadd [#allocation4], 4294967280 }
   0xe   :  { %27 = sfence }
   0xf   :  { %v37_v0 = vld [vmem:[%s453_s0] sm:$0xff]  ;;  %v38_v1 = vld [vmem:[%s453_s0 + $0x8] sm:$0xff]  ;;  %vm39_vm0 = vcmask 261120   ;;  %v353_v2 = vmov 0.0|0.0   ;;  %vm354_vm2 = vmmov 0   ;;  %v355_v4 = vmov 0.0  }
  0x10   :  { %301 = vmatprep.subr.bf16.mxu0 %v353_v2  ;;  %v302_v3 = vpack.c.bf16 %v38_v1, %v37_v0  ;;  %vm303_vm1 = vmpackc.low %vm39_vm0, %vm39_vm0  ;;  %274 = vmatprep.mubr.msk.f32.mxu0 %vm354_vm2, %v355_v4  ;;  %v28_v5 = vld [vmem:[%s454_s1] sm:$0xff]  ;;  %v33_v6 = vld [vmem:[%s454_s1 + $0x28] sm:$0xff]  ;;  %vm194_vm3 = vcmask 130048   ;;  %s183_s10 = sld [smem:[#allocation2]]  ;;  %s258_s11 = sld [smem:[#allocation2 + $0x2]]  ;;  %vm229_vm4 = vcmask 122880  }
  0x11   :  { %305 = vmatprep.subr.bf16.mxu1 %v353_v2  ;;  %289 = vmatprep.mubr.msk.f32.mxu1 %vm354_vm2, %v355_v4  ;;  %v29_v7 = vld [vmem:[%s454_s1 + $0x8] sm:$0xff]  ;;  %v34_v8 = vld [vmem:[%s454_s1 + $0x30] sm:$0xff]  ;;  %v35_v10 = vld [vmem:[%s454_s1 + $0x38] sm:$0xff]  ;;  %s356_s12 = smov [#allocation5]  }
  0x12   :  { %304 = vmatpush3.bf16.xpose.msk.msra.mxu0 %vm303_vm1, %v302_v3  ;;  %306 = vmatpush3.bf16.xpose.msk.msra.mxu1 %vm303_vm1, %v302_v3  ;;  %v30_v9 = vld [vmem:[%s454_s1 + $0x10] sm:$0xff]  ;;  %v31_v11 = vld [vmem:[%s454_s1 + $0x18] sm:$0xff]  ;;  %v36_v12 = vld [vmem:[%s454_s1 + $0x40] sm:$0xff]  ;;  %s237_s13 = sshll.u32 %s356_s12, 4  ;;  %s238_s13 = int_to_ptr.vmem [resolvable:$true] %s237_s13 }
  0x13   :  { %v32_v13 = vld [vmem:[%s454_s1 + $0x20] sm:$0xff]  ;;  %s257_s1 = sld [smem:[#allocation2 + $0x1]]  ;;  %s326_s14 = scalar_lea.vmem %s238_s13, 16 }
  0x14   :  { %p327_p5 = scmp.ne.s32.totalorder %s238_s13, %s326_s14  ;;  %s330_s15 = scalar_lea.vmem %s238_s13, 32 }
  0x15   :  { %p331_p6 = scmp.lt.s32.totalorder %s238_s13, %s238_s13  ;;  %p332_p7 = scmp.lt.s32.totalorder %s330_s15, %s326_s14 }
  0x16   :  { %v184_v1 = vstv %s183_s10 }
  0x17   :  { %p333_p8 = por %p332_p7, %p331_p6 }
  0x19   :  { %275 = vmatmul.mubr.msk.f32.vlgmr.msra.gmra.mrb[0].mxu0 %vm39_vm0, %v28_v5  ;;  %290 = vmatmul.mubr.msk.f32.vlgmr.msra.gmra.mrb[0].mxu1 %vm39_vm0, %v33_v6  ;;  %v218_v61 = vstv %s257_s1  ;;  %v227_v5 = vstv %s258_s11  ;;  %p334_p9 = pnand %p333_p8, %p327_p5 }
  0x1a   :  { %277 = vmatprep.mubr.msk.f32.mxu0 %vm354_vm2, %v355_v4  ;;  %292 = vmatprep.mubr.msk.f32.mxu1 %vm354_vm2, %v355_v4 }
  0x1d   :  { %278 = vmatmul.mubr.msk.f32.gmra.mrb[2].mxu0 %vm39_vm0, %v29_v7  ;;  %293 = vmatmul.mubr.msk.f32.gmra.mrb[2].mxu1 %vm39_vm0, %v34_v8 }
  0x1e   :  { %280 = vmatprep.mubr.msk.f32.mxu0 %vm354_vm2, %v355_v4  ;;  %295 = vmatprep.mubr.msk.f32.mxu1 %vm354_vm2, %v355_v4 }
  0x21   :  { %281 = vmatmul.mubr.msk.f32.gmra.mrb[4].mxu0 %vm39_vm0, %v30_v9  ;;  %296 = vmatmul.mubr.msk.f32.gmra.mrb[4].mxu1 %vm39_vm0, %v35_v10 }
  0x22   :  { %283 = vmatprep.mubr.msk.f32.mxu0 %vm354_vm2, %v355_v4  ;;  %298 = vmatprep.mubr.msk.f32.mxu1 %vm354_vm2, %v355_v4 }
  0x25   :  { %284 = vmatmul.mubr.msk.f32.gmra.mrb[6].mxu0 %vm39_vm0, %v31_v11  ;;  %299 = vmatmul.mubr.msk.f32.gmra.mrb[6].mxu1 %vm39_vm0, %v36_v12 }
  0x26   :  { %286 = vmatprep.mubr.msk.f32.mxu0 %vm354_vm2, %v355_v4 }
  0x29   :  { %287 = vmatmul.mubr.msk.f32.gmra.mrb[8].mxu0 %vm39_vm0, %v32_v13 }
  0xec   :  { %v139_v14 = vpop.f32.mrb[0].mxu0  ;;  %v164_v15 = vpop.f32.mrb[0].mxu1 }
  0xed   :  { %v276_v16 = vpop.f32.mrb[1].mxu0  ;;  %v291_v17 = vpop.f32.mrb[1].mxu1  ;;  %v186_v18 = vmul.f32 %v139_v14, %v139_v14  ;;  %v191_v42 = vmul.f32 %v164_v15, %v164_v15 }
  0xef   :  { %v195_v24 = vsel %vm194_vm3, %v186_v18, 0.0  ;;  %v204_v49 = vsel %vm194_vm3, %v191_v42, 0.0 }
  0xf0   :  { %v144_v19 = vpop.f32.mrb[2].mxu0  ;;  %v169_v20 = vpop.f32.mrb[2].mxu1 }
  0xf1   :  { %v187_v21 = vmul.f32 %v144_v19, %v144_v19  ;;  %v279_v22 = vpop.f32.mrb[3].mxu0  ;;  %v294_v23 = vpop.f32.mrb[3].mxu1  ;;  %v192_v46 = vmul.f32 %v169_v20, %v169_v20 }
  0xf3   :  { %v196_v25 = vsel %vm194_vm3, %v187_v21, 0.0  ;;  %v206_v51 = vsel %vm194_vm3, %v192_v46, 0.0 }
  0xf4   :  { %v197_v26 = vadd.f32 %v196_v25, %v195_v24  ;;  %v149_v27 = vpop.f32.mrb[4].mxu0  ;;  %v174_v28 = vpop.f32.mrb[4].mxu1 }
  0xf5   :  { %v188_v29 = vmul.f32 %v149_v27, %v149_v27  ;;  %v282_v30 = vpop.f32.mrb[5].mxu0  ;;  %v297_v31 = vpop.f32.mrb[5].mxu1  ;;  %v193_v47 = vmul.f32 %v174_v28, %v174_v28 }
  0xf7   :  { %v198_v32 = vsel %vm194_vm3, %v188_v29, 0.0  ;;  %v208_v52 = vsel %vm194_vm3, %v193_v47, 0.0 }
  0xf8   :  { %v199_v33 = vadd.f32 %v198_v32, %v197_v26  ;;  %v154_v34 = vpop.f32.mrb[6].mxu0  ;;  %v179_v35 = vpop.f32.mrb[6].mxu1 }
  0xf9   :  { %v189_v36 = vmul.f32 %v154_v34, %v154_v34  ;;  %v285_v37 = vpop.f32.mrb[7].mxu0  ;;  %v300_v38 = vpop.f32.mrb[7].mxu1  ;;  %v185_v3 = vadd.f32 %v184_v1, %v179_v35 }
  0xfb   :  { %v200_v39 = vsel %vm194_vm3, %v189_v36, 0.0 }
  0xfc   :  { %v201_v40 = vadd.f32 %v200_v39, %v199_v33  ;;  %v159_v41 = vpop.f32.mrb[8].mxu0 }
  0xfd   :  { %v190_v43 = vmul.f32 %v159_v41, %v159_v41  ;;  %v288_v44 = vpop.f32.mrb[9].mxu0 }
  0xff   :  { %v202_v45 = vsel %vm194_vm3, %v190_v43, 0.0 }
 0x100   :  { %v203_v48 = vadd.f32 %v202_v45, %v201_v40 }
 0x102   :  { %v205_v50 = vadd.f32 %v204_v49, %v203_v48 }
 0x104   :  { %v207_v53 = vadd.f32 %v206_v51, %v205_v50 }
 0x106   :  { %v209_v54 = vadd.f32 %v208_v52, %v207_v53 }
 0x108   :  { %v210_v55 = vrot.slane %v209_v54, 4 }
 0x10a   :  { %v211_v56 = vadd.f32 %v210_v55, %v209_v54 }
 0x10c   :  { %v212_v57 = vrot.slane %v211_v56, 2 }
 0x10e   :  { %v213_v58 = vadd.f32 %v212_v57, %v211_v56 }
 0x110   :  { %v214_v59 = vrot.slane %v213_v58, 1 }
 0x112   :  { %v215_v60 = vadd.f32 %v214_v59, %v213_v58 }
 0x114   :  { %v216_v62 = vadd.f32 %v215_v60, %v179_v35 }
 0x116   :  { %v219_v63 = vadd.f32 %v218_v61, %v216_v62 }
 0x118   :  { %v220_v0 = vmax.f32 %v219_v63, 1e-24 }
 0x11a   :  { %312 = vrsqrt.f32 %v220_v0 }
 0x124   :  { %v313_v2 = vpop.eup %312 }
 0x125   :  { %v223_v4 = vrot.slane %v313_v2, 1 }
 0x127   :  { %v225_v6 = vmul.f32 %v223_v4, %v185_v3 }
 0x129   :  { %v228_v7 = vadd.f32 %v227_v5, %v225_v6 }
 0x12b   :  { %230 = vst.msk [vmem:[#allocation5] sm:$0x1] %vm229_vm4, %v228_v7 }
 0x12c   :  { %337 = shalt.err (!%p334_p9)
}
 0x12d   :  { %s338_s18 = scalar_lea.hbm %s456_s3, 16 }
 0x12e   :  { %p339_p10 = scmp.ne.s32.totalorder %s456_s3, %s338_s18  ;;  %p342_p11 = scmp.lt.u32.totalorder %s338_s18, %s456_s3 }
 0x130   :  { %p344_p12 = pnand %p342_p11, %p339_p10 }
 0x132   :  { %347 = shalt.err (!%p344_p12)
}
 0x133   :  { %240 = dma.vmem_to_hbm [thread:$0]  %s238_s13, 16, %s456_s3, [#allocation3]  }
 0x134   :  { %350 = dma.done.wait [#allocation3], 16  }
 0x135   :  { %351 = vsyncadd [#allocation3], 4294967280 }
 0x136   :  { %244 = vsyncpa [#allocation3], 1 }
 0x137   :  { %245 = vsyncpa [#allocation4], 1 }

</bundles_post_ra>
